<compile_context>
chip_gen: v5e
topology: v5e:2x2
jax: 0.10.0
libtpu: 0.0.40
codegen_flags: <defaults>
</compile_context>

<pallas_src>
import functools
import math

import jax
import jax.numpy as jnp
from jax import lax
from jax.experimental import pallas as pl
from jax.experimental.pallas import tpu as pltpu

NUM_EMB = 95          # vocabulary size from the module
PADDED_ROWS = 128     # pad vocab rows to lane width -> clean 128-deep MXU contraction


# ---------------------------------------------------------------------------
# Kernels
# ---------------------------------------------------------------------------
def _gather_kernel_transposed(idx_ref, tbl_t_ref, out_ref):
    # idx_ref:   (1, TN)            int32   -- block of flattened indices (lane-major)
    # tbl_t_ref: (H, PADDED_ROWS)   float32 -- transposed, zero-padded table (resident in VMEM)
    # out_ref:   (H, TN)            float32 -- transposed output block (TN lanes => lane-dense)
    idx = idx_ref[...]                                                  # (1, TN)
    tn = idx.shape[1]
    rows = lax.broadcasted_iota(jnp.int32, (PADDED_ROWS, tn), 0)        # (128, TN)
    one_hot_t = (rows == idx).astype(tbl_t_ref.dtype)                   # (128, TN)
    # Exact gather as a matmul on the MXU: (H,128) @ (128,TN) -> (H,TN).
    out_ref[...] = jnp.dot(
        tbl_t_ref[...], one_hot_t, preferred_element_type=jnp.float32
    ).astype(out_ref.dtype)


def _gather_kernel_natural(idx_ref, tbl_ref, out_ref):
    # idx_ref: (TN, 1)              int32   -- block of flattened indices (sublane-major)
    # tbl_ref: (PADDED_ROWS, H)     float32 -- zero-padded table (H % 128 == 0)
    # out_ref: (TN, H)              float32 -- natural-layout block (H lanes => lane-dense)
    idx = idx_ref[...]                                                  # (TN, 1)
    tn = idx.shape[0]
    cols = lax.broadcasted_iota(jnp.int32, (tn, PADDED_ROWS), 1)        # (TN, 128)
    one_hot = (cols == idx).astype(tbl_ref.dtype)                       # (TN, 128)
    out_ref[...] = jnp.dot(
        one_hot, tbl_ref[...], preferred_element_type=jnp.float32
    ).astype(out_ref.dtype)


# ---------------------------------------------------------------------------
# Forward wrappers
# ---------------------------------------------------------------------------
def _pick_tile(n, hidden, tn_max):
    """Index-tile size: multiple of 128, capped by a ~2 MiB f32 output-block budget."""
    budget_elems = (2 * 1024 * 1024) // 4
    tn_cap = max(128, (budget_elems // max(hidden, 1)) // 128 * 128)
    tn = min(tn_max, tn_cap, pl.cdiv(max(n, 1), 128) * 128)
    return max(tn, 128)


def _embedding_forward(x, tbl, *, natural, tn_max=1024):
    """out = weight[x]; `tbl` is the padded table prepared at init.

    natural=True : tbl is (128, H) with H % 128 == 0 -> kernel writes (N, H) directly.
    natural=False: tbl is (H, 128)                   -> kernel writes (H, N), wrapper transposes.
    """
    orig_shape = x.shape
    hidden = tbl.shape[1] if natural else tbl.shape[0]

    idx = x.reshape(-1).astype(jnp.int32)
    n = idx.shape[0]

    tn = _pick_tile(n, hidden, tn_max)
    n_pad = (-n) % tn
    np_cols = n + n_pad
    idx_flat = jnp.pad(idx, (0, n_pad))        # padded tail selects row 0; sliced off below
    grid = (np_cols // tn,)
    cparams = pltpu.CompilerParams(dimension_semantics=("parallel",))

    if natural:
        out = pl.pallas_call(
            _gather_kernel_natural,
            out_shape=jax.ShapeDtypeStruct((np_cols, hidden), tbl.dtype),
            grid_spec=pltpu.PrefetchScalarGridSpec(
                num_scalar_prefetch=0,
                grid=grid,
                in_specs=[
                    pl.BlockSpec((tn, 1), lambda i: (i, 0)),                 # index block
                    pl.BlockSpec((PADDED_ROWS, hidden), lambda i: (0, 0)),   # full table, constant
                ],
                out_specs=pl.BlockSpec((tn, hidden), lambda i: (i, 0)),      # lane-dense (H lanes)
            ),
            compiler_params=cparams,
        )(idx_flat.reshape(np_cols, 1), tbl)
        out = out[:n]                                                        # (N, H)
    else:
        out_t = pl.pallas_call(
            _gather_kernel_transposed,
            out_shape=jax.ShapeDtypeStruct((hidden, np_cols), tbl.dtype),
            grid_spec=pltpu.PrefetchScalarGridSpec(
                num_scalar_prefetch=0,
                grid=grid,
                in_specs=[
                    pl.BlockSpec((1, tn), lambda i: (0, i)),                 # index block
                    pl.BlockSpec((hidden, PADDED_ROWS), lambda i: (0, 0)),   # full table, constant
                ],
                out_specs=pl.BlockSpec((hidden, tn), lambda i: (0, i)),      # lane-dense (TN lanes)
            ),
            compiler_params=cparams,
        )(idx_flat.reshape(1, np_cols), tbl)
        out = out_t[:, :n].T                                                 # (N, H) (layout plumbing)

    return out.reshape(*orig_shape, hidden)


class EmbeddingBlock:
    """Pallas equivalent of the PyTorch EmbeddingBlock (forward = embedding lookup)."""

    def __init__(self, hidden_channels, weight=None, key=None):
        self.hidden_channels = hidden_channels
        if weight is None:
            if key is None:
                key = jax.random.PRNGKey(0)
            weight = (3.0 / math.sqrt(hidden_channels)) * jax.random.normal(
                key, (NUM_EMB, hidden_channels), dtype=jnp.float32
            )
        self.weight = weight
        # One-time table prep (zero-pad 95 -> 128 rows; pick lane-dense orientation).
        self._natural = (hidden_channels % 128 == 0)
        tbl = jnp.zeros((PADDED_ROWS, hidden_channels), weight.dtype).at[:NUM_EMB].set(weight)
        self.table = tbl if self._natural else tbl.T
        self._fwd = jax.jit(functools.partial(_embedding_forward, natural=self._natural))

    def __call__(self, x):
        return self._fwd(x, self.table)


# ---------------------------------------------------------------------------
# Self-test
# ---------------------------------------------------------------------------
if __name__ == "__main__":
    key = jax.random.PRNGKey(0)
    k_w, k_x, k_w2, k_x2 = jax.random.split(key, 4)

    # Case 1: hidden=32, seq=8 -> transposed lane-dense path (H < 128).
    hidden_channels = 32
    seq = 8
    emb_weight = (3.0 / math.sqrt(hidden_channels)) * jax.random.normal(
        k_w, (NUM_EMB, hidden_channels), dtype=jnp.float32
    )
    x = jax.random.randint(k_x, (seq,), 0, NUM_EMB, dtype=jnp.int32)
    block = EmbeddingBlock(hidden_channels, weight=emb_weight)
    out = jax.block_until_ready(block(x))
    ref = emb_weight[x]
    assert out.shape == (seq, hidden_channels)
    assert jnp.allclose(out, ref, atol=1e-6, rtol=1e-6)

    # Case 2: hidden=128, 2-D index batch -> natural lane-dense path (no wrapper transpose).
    hidden2 = 128
    emb_weight2 = (3.0 / math.sqrt(hidden2)) * jax.random.normal(
        k_w2, (NUM_EMB, hidden2), dtype=jnp.float32
    )
    x2 = jax.random.randint(k_x2, (4, 7), 0, NUM_EMB, dtype=jnp.int32)
    block2 = EmbeddingBlock(hidden2, weight=emb_weight2)
    out2 = jax.block_until_ready(block2(x2))
    ref2 = emb_weight2[x2]
    assert out2.shape == (4, 7, hidden2)
    assert jnp.allclose(out2, ref2, atol=1e-6, rtol=1e-6)

    print("KERNEL_OK")
</pallas_src>

<mosaic_0001>
module attributes {stable_mosaic.version = 11 : i64} {
  func.func @_gather_kernel_transposed(%arg0: i32, %arg1: memref<1x128xi32, #tpu.memory_space<vmem>>, %arg2: memref<32x128xf32, #tpu.memory_space<vmem>>, %arg3: memref<32x128xf32, #tpu.memory_space<vmem>>) attributes {dimension_semantics = [#tpu.dimension_semantics<parallel>], iteration_bounds = array<i64: 1>, scalar_prefetch = 0 : i64, scratch_operands = 0 : i64, tpu.core_type = #tpu.core_type<tc>, window_params = [{transform_indices = @transform_0, window_bounds = array<i64: 1, 128>}, {pipeline_mode = #tpu.pipeline_mode<synchronous>, transform_indices = @transform_1, window_bounds = array<i64: 32, 128>}, {transform_indices = @transform_2, window_bounds = array<i64: 32, 128>}]} {
    %c0 = arith.constant 0 : index
    %c0_0 = arith.constant 0 : index
    %0 = vector.load %arg1[%c0, %c0_0] : memref<1x128xi32, #tpu.memory_space<vmem>>, vector<1x128xi32>
    %1 = tpu.iota {dimensions = array<i32: 0>} : vector<128x128xi32>
    %2 = vector.broadcast %0 : vector<1x128xi32> to vector<128x128xi32>
    %3 = arith.cmpi eq, %1, %2 : vector<128x128xi32>
    %4 = arith.extui %3 : vector<128x128xi1> to vector<128x128xi32>
    %5 = arith.sitofp %4 : vector<128x128xi32> to vector<128x128xf32>
    %c0_1 = arith.constant 0 : index
    %c0_2 = arith.constant 0 : index
    %6 = vector.load %arg2[%c0_1, %c0_2] : memref<32x128xf32, #tpu.memory_space<vmem>>, vector<32x128xf32>
    %cst = arith.constant dense<0.000000e+00> : vector<32x128xf32>
    %7 = tpu.matmul %6, %5, %cst {dimension_numbers = #tpu.dot_dimension_numbers<[1], [0], [0], [1], [0, 0, 1, 1], [], []>} : vector<32x128xf32>, vector<128x128xf32>, vector<32x128xf32> -> vector<32x128xf32>
    %c0_3 = arith.constant 0 : index
    %c0_4 = arith.constant 0 : index
    %8 = vector.load %arg3[%c0_3, %c0_4] : memref<32x128xf32, #tpu.memory_space<vmem>>, vector<32x128xf32>
    tpu.vector_store %arg3[%c0_3, %c0_4], %7 {strides = array<i32>} : memref<32x128xf32, #tpu.memory_space<vmem>>, vector<32x128xf32>,
    return
  }
  func.func @transform_0(%arg0: i32) -> (i32, i32) {
    %c0_i32 = arith.constant 0 : i32
    %c0_i32_0 = arith.constant 0 : i32
    return %c0_i32, %arg0 : i32, i32
  }
  func.func @transform_1(%arg0: i32) -> (i32, i32) {
    %c0_i32 = arith.constant 0 : i32
    %c0_i32_0 = arith.constant 0 : i32
    %c0_i32_1 = arith.constant 0 : i32
    return %c0_i32, %c0_i32_0 : i32, i32
  }
  func.func @transform_2(%arg0: i32) -> (i32, i32) {
    %c0_i32 = arith.constant 0 : i32
    %c0_i32_0 = arith.constant 0 : i32
    return %c0_i32, %arg0 : i32, i32
  }
}

</mosaic_0001>

<bundles_post_ra>
// kernel: _embedding_forward.1
= control target key start
LH: loop header
LB: loop body
LE: loop exit
PB: predicated region body
PF: predicated region fallthrough
CT: control target
= control target key end

     0   :  { %7 = vsyncpa [#allocation3], 0  ;;  %s247_s12 = smov [#allocation2]   ;;  %s248_s14 = smov 128   ;;  %s396_s0 = inlined_call_operand.vmem [shape: s32[1,128], index: 0, kind: input, shape index: {}]   ;;  %s397_s1 = inlined_call_operand.hbm [shape: f32[32,128], index: 1, kind: input, shape index: {}]   ;;  %s398_s2 = inlined_call_operand.vmem [shape: f32[32,128], index: 2, kind: output, shape index: {}]  }
   0x1   :  { %s14_s11 = sshll.u32 %s397_s1, 4  ;;  %s16_s13 = sshll.u32 %s247_s12, 4  ;;  %s15_s11 = int_to_ptr.hbm [resolvable:$true] %s14_s11  ;;  %s17_s13 = int_to_ptr.vmem [resolvable:$true] %s16_s13 }
   0x2   :  { %s249_s15 = smov 8  }
   0x3   :  { %22 = dma.hbm_to_vmem [thread:$0]  %s15_s11, 512, %s17_s13, [#allocation3], %s248_s14, %s248_s14, %s249_s15  }
   0x4   :  { %245 = dma.done.wait [#allocation3], 512  }
   0x5   :  { %246 = vsyncadd [#allocation3], 4294966784  ;;  %v28_v0 = vlaneseq  ;;  %v276_v4 = vld [vmem:[%s396_s0] ss:$0 sm:$0xff]  ;;  %v250_v7 = vmov 1.0   ;;  %v96_v19 = vld [vmem:[#allocation2 + $0x10] sm:$0xff] }
   0x6   :  { %v97_v20 = vld [vmem:[#allocation2 + $0x18] sm:$0xff]  ;;  %v94_v21 = vld [vmem:[#allocation2] sm:$0xff]  ;;  %v95_v22 = vld [vmem:[#allocation2 + $0x8] sm:$0xff] }
   0x7   :  { %v269_v1 = vshrl.u32 %v28_v0, 7 }
   0x9   :  { %v44_v2 = vadd.s32 120, %v269_v1  ;;  %v43_v3 = vadd.s32 112, %v269_v1  ;;  %v42_v5 = vadd.s32 104, %v269_v1  ;;  %v41_v6 = vadd.s32 96, %v269_v1 }
   0xa   :  { %v40_v8 = vadd.s32 88, %v269_v1  ;;  %v39_v9 = vadd.s32 80, %v269_v1  ;;  %v38_v10 = vadd.s32 72, %v269_v1  ;;  %v37_v11 = vadd.s32 64, %v269_v1 }
   0xb   :  { %vm61_vm0 = vcmp.eq.s32.totalorder %v44_v2, %v276_v4  ;;  %vm60_vm1 = vcmp.eq.s32.totalorder %v43_v3, %v276_v4  ;;  %vm59_vm2 = vcmp.eq.s32.totalorder %v42_v5, %v276_v4  ;;  %vm58_vm3 = vcmp.eq.s32.totalorder %v41_v6, %v276_v4 }
   0xc   :  { %169 = vmatpush.msk.msra.mxu2 %vm61_vm0, %v250_v7  ;;  %170 = vmatpush.msk.msra.mxu3 %vm61_vm0, %v250_v7  ;;  %vm57_vm4 = vcmp.eq.s32.totalorder %v40_v8, %v276_v4  ;;  %vm56_vm5 = vcmp.eq.s32.totalorder %v39_v9, %v276_v4  ;;  %vm55_vm6 = vcmp.eq.s32.totalorder %v38_v10, %v276_v4  ;;  %v36_v12 = vadd.s32 56, %v269_v1 }
   0xd   :  { %152 = vmatpush.msk.msra.mxu0 %vm61_vm0, %v250_v7  ;;  %168 = vmatpush.msk.msra.mxu1 %vm61_vm0, %v250_v7  ;;  %vm54_vm7 = vcmp.eq.s32.totalorder %v37_v11, %v276_v4  ;;  %v35_v13 = vadd.s32 48, %v269_v1  ;;  %v34_v14 = vadd.s32 40, %v269_v1  ;;  %v33_v15 = vadd.s32 32, %v269_v1 }
   0xe   :  { %172 = vmatpush.msk.msra.mxu2 %vm60_vm1, %v250_v7  ;;  %173 = vmatpush.msk.msra.mxu3 %vm60_vm1, %v250_v7  ;;  %vm53_vm8 = vcmp.eq.s32.totalorder %v36_v12, %v276_v4  ;;  %v32_v16 = vadd.s32 24, %v269_v1  ;;  %v31_v17 = vadd.s32 16, %v269_v1  ;;  %v30_v18 = vadd.s32 8, %v269_v1 }
   0xf   :  { %153 = vmatpush.msk.msra.mxu0 %vm60_vm1, %v250_v7  ;;  %171 = vmatpush.msk.msra.mxu1 %vm60_vm1, %v250_v7  ;;  %vm52_vm9 = vcmp.eq.s32.totalorder %v35_v13, %v276_v4  ;;  %vm51_vm10 = vcmp.eq.s32.totalorder %v34_v14, %v276_v4  ;;  %vm50_vm11 = vcmp.eq.s32.totalorder %v33_v15, %v276_v4 }
  0x10   :  { %175 = vmatpush.msk.msra.mxu2 %vm59_vm2, %v250_v7  ;;  %176 = vmatpush.msk.msra.mxu3 %vm59_vm2, %v250_v7  ;;  %vm49_vm12 = vcmp.eq.s32.totalorder %v32_v16, %v276_v4  ;;  %vm48_vm13 = vcmp.eq.s32.totalorder %v31_v17, %v276_v4  ;;  %vm47_vm14 = vcmp.eq.s32.totalorder %v30_v18, %v276_v4 }
  0x11   :  { %154 = vmatpush.msk.msra.mxu0 %vm59_vm2, %v250_v7  ;;  %174 = vmatpush.msk.msra.mxu1 %vm59_vm2, %v250_v7  ;;  %vm46_vm15 = vcmp.eq.s32.totalorder %v269_v1, %v276_v4 }
  0x12   :  { %178 = vmatpush.msk.msra.mxu2 %vm58_vm3, %v250_v7  ;;  %179 = vmatpush.msk.msra.mxu3 %vm58_vm3, %v250_v7 }
  0x13   :  { %155 = vmatpush.msk.msra.mxu0 %vm58_vm3, %v250_v7  ;;  %177 = vmatpush.msk.msra.mxu1 %vm58_vm3, %v250_v7 }
  0x14   :  { %181 = vmatpush.msk.msra.mxu2 %vm57_vm4, %v250_v7  ;;  %182 = vmatpush.msk.msra.mxu3 %vm57_vm4, %v250_v7 }
  0x15   :  { %156 = vmatpush.msk.msra.mxu0 %vm57_vm4, %v250_v7  ;;  %180 = vmatpush.msk.msra.mxu1 %vm57_vm4, %v250_v7 }
  0x16   :  { %184 = vmatpush.msk.msra.mxu2 %vm56_vm5, %v250_v7  ;;  %185 = vmatpush.msk.msra.mxu3 %vm56_vm5, %v250_v7 }
  0x17   :  { %157 = vmatpush.msk.msra.mxu0 %vm56_vm5, %v250_v7  ;;  %183 = vmatpush.msk.msra.mxu1 %vm56_vm5, %v250_v7 }
  0x18   :  { %187 = vmatpush.msk.msra.mxu2 %vm55_vm6, %v250_v7  ;;  %188 = vmatpush.msk.msra.mxu3 %vm55_vm6, %v250_v7 }
  0x19   :  { %158 = vmatpush.msk.msra.mxu0 %vm55_vm6, %v250_v7  ;;  %186 = vmatpush.msk.msra.mxu1 %vm55_vm6, %v250_v7 }
  0x1a   :  { %190 = vmatpush.msk.msra.mxu2 %vm54_vm7, %v250_v7  ;;  %191 = vmatpush.msk.msra.mxu3 %vm54_vm7, %v250_v7 }
  0x1b   :  { %159 = vmatpush.msk.msra.mxu0 %vm54_vm7, %v250_v7  ;;  %189 = vmatpush.msk.msra.mxu1 %vm54_vm7, %v250_v7 }
  0x1c   :  { %193 = vmatpush.msk.msra.mxu2 %vm53_vm8, %v250_v7  ;;  %194 = vmatpush.msk.msra.mxu3 %vm53_vm8, %v250_v7 }
  0x1d   :  { %160 = vmatpush.msk.msra.mxu0 %vm53_vm8, %v250_v7  ;;  %192 = vmatpush.msk.msra.mxu1 %vm53_vm8, %v250_v7 }
  0x1e   :  { %196 = vmatpush.msk.msra.mxu2 %vm52_vm9, %v250_v7  ;;  %197 = vmatpush.msk.msra.mxu3 %vm52_vm9, %v250_v7 }
  0x1f   :  { %161 = vmatpush.msk.msra.mxu0 %vm52_vm9, %v250_v7  ;;  %195 = vmatpush.msk.msra.mxu1 %vm52_vm9, %v250_v7 }
  0x20   :  { %199 = vmatpush.msk.msra.mxu2 %vm51_vm10, %v250_v7  ;;  %200 = vmatpush.msk.msra.mxu3 %vm51_vm10, %v250_v7 }
  0x21   :  { %162 = vmatpush.msk.msra.mxu0 %vm51_vm10, %v250_v7  ;;  %198 = vmatpush.msk.msra.mxu1 %vm51_vm10, %v250_v7 }
  0x22   :  { %202 = vmatpush.msk.msra.mxu2 %vm50_vm11, %v250_v7  ;;  %203 = vmatpush.msk.msra.mxu3 %vm50_vm11, %v250_v7 }
  0x23   :  { %163 = vmatpush.msk.msra.mxu0 %vm50_vm11, %v250_v7  ;;  %201 = vmatpush.msk.msra.mxu1 %vm50_vm11, %v250_v7 }
  0x24   :  { %205 = vmatpush.msk.msra.mxu2 %vm49_vm12, %v250_v7  ;;  %206 = vmatpush.msk.msra.mxu3 %vm49_vm12, %v250_v7 }
  0x25   :  { %164 = vmatpush.msk.msra.mxu0 %vm49_vm12, %v250_v7  ;;  %204 = vmatpush.msk.msra.mxu1 %vm49_vm12, %v250_v7 }
  0x26   :  { %208 = vmatpush.msk.msra.mxu2 %vm48_vm13, %v250_v7  ;;  %209 = vmatpush.msk.msra.mxu3 %vm48_vm13, %v250_v7 }
  0x27   :  { %165 = vmatpush.msk.msra.mxu0 %vm48_vm13, %v250_v7  ;;  %207 = vmatpush.msk.msra.mxu1 %vm48_vm13, %v250_v7 }
  0x28   :  { %211 = vmatpush.msk.msra.mxu2 %vm47_vm14, %v250_v7  ;;  %212 = vmatpush.msk.msra.mxu3 %vm47_vm14, %v250_v7 }
  0x29   :  { %166 = vmatpush.msk.msra.mxu0 %vm47_vm14, %v250_v7  ;;  %210 = vmatpush.msk.msra.mxu1 %vm47_vm14, %v250_v7 }
  0x2a   :  { %214 = vmatpush.msk.msra.mxu2 %vm46_vm15, %v250_v7  ;;  %215 = vmatpush.msk.msra.mxu3 %vm46_vm15, %v250_v7 }
  0x2b   :  { %120 = vmatmul.f32.vlgmr.msra.gmra.mxu2 %v96_v19  ;;  %123 = vmatmul.f32.vlgmr.msra.gmra.mxu3 %v97_v20 }
  0x2c   :  { %167 = vmatpush.msk.msra.mxu0 %vm46_vm15, %v250_v7  ;;  %213 = vmatpush.msk.msra.mxu1 %vm46_vm15, %v250_v7 }
  0x2d   :  { %114 = vmatmul.f32.vlgmr.msra.gmra.mxu0 %v94_v21  ;;  %117 = vmatmul.f32.vlgmr.msra.gmra.mxu1 %v95_v22 }
  0xaa   :  { %v115_v23 = vpop.f32.mrf.mxu0  ;;  %v118_v24 = vpop.f32.mrf.mxu1 }
  0xab   :  { %127 = vst [vmem:[%s398_s2] sm:$0xff] %v115_v23 }
  0xac   :  { %128 = vst [vmem:[%s398_s2 + $0x8] sm:$0xff] %v118_v24 }
  0xae   :  { %v121_v25 = vpop.f32.mrf.mxu2  ;;  %v124_v26 = vpop.f32.mrf.mxu3 }
  0xaf   :  { %129 = vst [vmem:[%s398_s2 + $0x10] sm:$0xff] %v121_v25 }
  0xb0   :  { %130 = vst [vmem:[%s398_s2 + $0x18] sm:$0xff] %v124_v26 }
  0xb1   :  { %135 = vsyncpa [#allocation3], 1 }

</bundles_post_ra>
